<compile_context>
chip_gen: v5e
topology: v5e:2x2
jax: 0.10.0
libtpu: 0.0.40
codegen_flags: <defaults>
</compile_context>

<pallas_src>
import functools
import math

import jax
import jax.numpy as jnp
from jax.experimental import pallas as pl
from jax.experimental.pallas import tpu as pltpu


def _round_up(v, m):
    return ((v + m - 1) // m) * m


def _fused_mlp_kernel(n_layers, *refs):
    """Fully-fused MLP. refs = (x_bf16, w0, b0, ..., w{L-1}, b{L-1}, out_f32)."""
    x_ref = refs[0]
    o_ref = refs[1 + 2 * n_layers]

    act_bf16 = x_ref[...]                       # (tm, in0_p) bf16, already lane-padded
    act_f32 = None
    for l in range(n_layers):
        w_ref = refs[1 + 2 * l]                 # (in_p, out_p) bf16, VMEM-resident
        b_ref = refs[2 + 2 * l]                 # (1, out_p)    fp32
        acc = jnp.dot(act_bf16, w_ref[...], preferred_element_type=jnp.float32)
        act_f32 = acc + b_ref[...]              # fp32 epilogue (v5e-friendly)
        if l + 1 < n_layers:
            act_bf16 = act_f32.astype(jnp.bfloat16)
    o_ref[...] = act_f32.astype(o_ref.dtype)


def prepare_params(params):
    """One-time param prep: bf16 weights + zero-pad every feature dim to a multiple of 128.

    params:  list of (w_t, b) with w_t (in, out) fp32 (= torch W.T), b (1, out) fp32.
    returns: list of (w_bf16_padded (in_p, out_p), b_f32_padded (1, out_p), in_f, out_f).
    """
    prepped = []
    for w_t, b in params:
        in_f, out_f = w_t.shape
        in_p, out_p = _round_up(in_f, 128), _round_up(out_f, 128)
        w_pad = (
            jnp.zeros((in_p, out_p), jnp.bfloat16)
            .at[:in_f, :out_f]
            .set(w_t.astype(jnp.bfloat16))
        )
        b_pad = (
            jnp.zeros((1, out_p), jnp.float32)
            .at[:, :out_f]
            .set(b.reshape(1, out_f).astype(jnp.float32))
        )
        prepped.append((w_pad, b_pad, in_f, out_f))
    return prepped


def multi_linear_mlp(x, prepped_params, *, max_batch_tile=512):
    """Forward pass of MultiLinearMLP: sequential Linear layers fused in one pallas_call.

    x:              (batch, in_features) fp32
    prepped_params: output of prepare_params() (bf16, 128-padded, cached across calls)
    """
    batch, in_f = x.shape
    n_layers = len(prepped_params)
    assert in_f == prepped_params[0][2], "input feature dim mismatch"
    in0_p = prepped_params[0][0].shape[0]
    outL_p = prepped_params[-1][0].shape[1]
    out_f = prepped_params[-1][3]

    # ---- batch tiling: 16-aligned (bf16 sublane packing), big tiles, >=2 steps if possible
    max_batch_tile = _round_up(max_batch_tile, 16)
    bp = _round_up(max(batch, 16), 16)
    if bp > max_batch_tile:
        tm = max_batch_tile
        bp = _round_up(bp, tm)
    elif bp >= 32:
        tm = _round_up(bp // 2, 16)           # >=2 grid steps -> both v7x TensorCores busy
        bp = _round_up(bp, tm)
    else:
        tm = bp                               # tiny batch: single 16-row tile

    # ---- activations: cast to bf16 + zero-pad batch/features in one wrapper-side op
    x_p = (
        jnp.zeros((bp, in0_p), jnp.bfloat16)
        .at[:batch, :in_f]
        .set(x.astype(jnp.bfloat16))
    )

    inputs = [x_p]
    for w, b, _, _ in prepped_params:
        inputs.append(w)
        inputs.append(b)

    # ---- VMEM budget (single-buffered weights, double-buffered act tiles, temporaries)
    weight_bytes = sum(int(w.size) * 2 for w, _, _, _ in prepped_params)
    bias_bytes = sum(int(b.size) * 4 for _, b, _, _ in prepped_params)
    x_tile_bytes = 2 * tm * in0_p * 2
    out_tile_bytes = 2 * tm * outL_p * 4
    act_tmp_bytes = sum(tm * int(w.shape[1]) * 6 for w, _, _, _ in prepped_params)
    vmem_est = weight_bytes + bias_bytes + x_tile_bytes + out_tile_bytes + act_tmp_bytes
    vmem_limit = int(min(max(2 * vmem_est, 32 * 1024 * 1024), 64 * 1024 * 1024))

    flops = 2 * bp * sum(int(w.shape[0]) * int(w.shape[1]) for w, _, _, _ in prepped_params)
    bytes_accessed = bp * in0_p * 2 + weight_bytes + bias_bytes + bp * outL_p * 4
    cost = pl.CostEstimate(flops=flops, bytes_accessed=bytes_accessed, transcendentals=0)

    kernel = functools.partial(_fused_mlp_kernel, n_layers)

    def _build(single_buffer_weights):
        in_specs = [pl.BlockSpec((tm, in0_p), lambda i: (i, 0))]
        for w, b, _, _ in prepped_params:
            if single_buffer_weights:
                in_specs.append(
                    pl.BlockSpec(w.shape, lambda i: (0, 0), pipeline_mode=pl.Buffered(1))
                )
                in_specs.append(
                    pl.BlockSpec(b.shape, lambda i: (0, 0), pipeline_mode=pl.Buffered(1))
                )
            else:
                in_specs.append(pl.BlockSpec(w.shape, lambda i: (0, 0)))
                in_specs.append(pl.BlockSpec(b.shape, lambda i: (0, 0)))
        return pl.pallas_call(
            kernel,
            out_shape=jax.ShapeDtypeStruct((bp, outL_p), jnp.float32),
            grid=(bp // tm,),
            in_specs=in_specs,
            out_specs=pl.BlockSpec((tm, outL_p), lambda i: (i, 0)),
            compiler_params=pltpu.CompilerParams(
                dimension_semantics=("parallel",),
                vmem_limit_bytes=vmem_limit,
            ),
            cost_estimate=cost,
        )

    try:
        out_padded = _build(True)(*inputs)
    except Exception:
        # Fallback for JAX versions whose auto-pipeliner rejects single-buffered
        # (Buffered(1)) resident weights; identical semantics, just 2x weight VMEM.
        out_padded = _build(False)(*inputs)

    return out_padded[:batch, :out_f]


def init_multi_linear_params(layers_dict, key):
    """Deterministic params mimicking nn.Linear default init.

    layers_dict: {'layer_0': d0, 'layer_1': d1, ...}
    Returns list of (w_t, b) with w_t (in, out) fp32 (= torch W.T), b (1, out) fp32.
    """
    dims = [layers_dict["layer_%i" % i] for i in range(len(layers_dict))]
    params = []
    for i in range(len(dims) - 1):
        in_f, out_f = dims[i], dims[i + 1]
        key, kw, kb = jax.random.split(key, 3)
        bound = 1.0 / math.sqrt(in_f)
        w = jax.random.uniform(kw, (out_f, in_f), jnp.float32, -bound, bound)
        b = jax.random.uniform(kb, (out_f,), jnp.float32, -bound, bound)
        params.append((w.T, b.reshape(1, out_f)))
    return params


def multi_linear_mlp_ref_bf16(x, params):
    """Pure-JAX reference with the same bf16-operand / fp32-accumulate numerics."""
    out = x
    for w_t, b in params:
        out = jnp.dot(
            out.astype(jnp.bfloat16),
            w_t.astype(jnp.bfloat16),
            preferred_element_type=jnp.float32,
        ) + b
    return out


def multi_linear_mlp_ref_fp32(x, params):
    out = x
    for w_t, b in params:
        out = out @ w_t + b
    return out


if __name__ == "__main__":
    # Consistent with MultiLinearMLP({'layer_0': 32, 'layer_1': 64, 'layer_2': 16})
    layers = {"layer_0": 32, "layer_1": 64, "layer_2": 16}
    batch = 8

    key = jax.random.PRNGKey(0)
    key, kx = jax.random.split(key)
    x = jax.random.normal(kx, (batch, layers["layer_0"]), jnp.float32)

    params = init_multi_linear_params(layers, key)
    prepped = prepare_params(params)   # one-time: bf16 cast + 128-lane zero-pad (cached)

    out = jax.block_until_ready(multi_linear_mlp(x, prepped))

    ref_bf16 = multi_linear_mlp_ref_bf16(x, params)
    ref_fp32 = multi_linear_mlp_ref_fp32(x, params)

    assert out.shape == (batch, layers["layer_2"])
    assert jnp.allclose(out, ref_bf16, atol=2e-3, rtol=2e-3)
    assert jnp.allclose(out, ref_fp32, atol=1e-1, rtol=1e-1)

    print("KERNEL_OK")
</pallas_src>

<mosaic_0001>
module attributes {stable_mosaic.version = 11 : i64} {
  func.func @_fused_mlp_kernel(%arg0: i32, %arg1: memref<16x128xbf16, #tpu.memory_space<vmem>>, %arg2: memref<128x128xbf16, #tpu.memory_space<vmem>>, %arg3: memref<1x128xf32, #tpu.memory_space<vmem>>, %arg4: memref<128x128xbf16, #tpu.memory_space<vmem>>, %arg5: memref<1x128xf32, #tpu.memory_space<vmem>>, %arg6: memref<16x128xf32, #tpu.memory_space<vmem>>) attributes {dimension_semantics = [#tpu.dimension_semantics<parallel>], iteration_bounds = array<i64: 1>, scalar_prefetch = 0 : i64, scratch_operands = 0 : i64, tpu.core_type = #tpu.core_type<tc>, window_params = [{transform_indices = @transform_0, window_bounds = array<i64: 16, 128>}, {pipeline_mode = #tpu.pipeline_mode<synchronous>, transform_indices = @transform_1, window_bounds = array<i64: 128, 128>}, {pipeline_mode = #tpu.pipeline_mode<synchronous>, transform_indices = @transform_2, window_bounds = array<i64: 1, 128>}, {pipeline_mode = #tpu.pipeline_mode<synchronous>, transform_indices = @transform_3, window_bounds = array<i64: 128, 128>}, {pipeline_mode = #tpu.pipeline_mode<synchronous>, transform_indices = @transform_4, window_bounds = array<i64: 1, 128>}, {transform_indices = @transform_5, window_bounds = array<i64: 16, 128>}]} {
    %c0 = arith.constant 0 : index
    %c0_0 = arith.constant 0 : index
    %0 = vector.load %arg1[%c0, %c0_0] : memref<16x128xbf16, #tpu.memory_space<vmem>>, vector<16x128xbf16>
    %c0_1 = arith.constant 0 : index
    %c0_2 = arith.constant 0 : index
    %1 = vector.load %arg2[%c0_1, %c0_2] : memref<128x128xbf16, #tpu.memory_space<vmem>>, vector<128x128xbf16>
    %cst = arith.constant dense<0.000000e+00> : vector<16x128xf32>
    %2 = tpu.matmul %0, %1, %cst {dimension_numbers = #tpu.dot_dimension_numbers<[1], [0], [0], [1], [0, 0, 1, 1], [], []>} : vector<16x128xbf16>, vector<128x128xbf16>, vector<16x128xf32> -> vector<16x128xf32>
    %c0_3 = arith.constant 0 : index
    %c0_4 = arith.constant 0 : index
    %3 = vector.load %arg3[%c0_3, %c0_4] : memref<1x128xf32, #tpu.memory_space<vmem>>, vector<1x128xf32>
    %4 = vector.broadcast %3 : vector<1x128xf32> to vector<16x128xf32>
    %5 = arith.addf %2, %4 : vector<16x128xf32>
    %6 = arith.truncf %5 : vector<16x128xf32> to vector<16x128xbf16>
    %c0_5 = arith.constant 0 : index
    %c0_6 = arith.constant 0 : index
    %7 = vector.load %arg4[%c0_5, %c0_6] : memref<128x128xbf16, #tpu.memory_space<vmem>>, vector<128x128xbf16>
    %cst_7 = arith.constant dense<0.000000e+00> : vector<16x128xf32>
    %8 = tpu.matmul %6, %7, %cst_7 {dimension_numbers = #tpu.dot_dimension_numbers<[1], [0], [0], [1], [0, 0, 1, 1], [], []>} : vector<16x128xbf16>, vector<128x128xbf16>, vector<16x128xf32> -> vector<16x128xf32>
    %c0_8 = arith.constant 0 : index
    %c0_9 = arith.constant 0 : index
    %9 = vector.load %arg5[%c0_8, %c0_9] : memref<1x128xf32, #tpu.memory_space<vmem>>, vector<1x128xf32>
    %10 = vector.broadcast %9 : vector<1x128xf32> to vector<16x128xf32>
    %11 = arith.addf %8, %10 : vector<16x128xf32>
    %c0_10 = arith.constant 0 : index
    %c0_11 = arith.constant 0 : index
    %12 = vector.load %arg6[%c0_10, %c0_11] : memref<16x128xf32, #tpu.memory_space<vmem>>, vector<16x128xf32>
    tpu.vector_store %arg6[%c0_10, %c0_11], %11 {strides = array<i32>} : memref<16x128xf32, #tpu.memory_space<vmem>>, vector<16x128xf32>,
    return
  }
  func.func @transform_0(%arg0: i32) -> (i32, i32) {
    %c0_i32 = arith.constant 0 : i32
    %c0_i32_0 = arith.constant 0 : i32
    return %arg0, %c0_i32 : i32, i32
  }
  func.func @transform_1(%arg0: i32) -> (i32, i32) {
    %c0_i32 = arith.constant 0 : i32
    %c0_i32_0 = arith.constant 0 : i32
    %c0_i32_1 = arith.constant 0 : i32
    return %c0_i32, %c0_i32_0 : i32, i32
  }
  func.func @transform_2(%arg0: i32) -> (i32, i32) {
    %c0_i32 = arith.constant 0 : i32
    %c0_i32_0 = arith.constant 0 : i32
    %c0_i32_1 = arith.constant 0 : i32
    return %c0_i32, %c0_i32_0 : i32, i32
  }
  func.func @transform_3(%arg0: i32) -> (i32, i32) {
    %c0_i32 = arith.constant 0 : i32
    %c0_i32_0 = arith.constant 0 : i32
    %c0_i32_1 = arith.constant 0 : i32
    return %c0_i32, %c0_i32_0 : i32, i32
  }
  func.func @transform_4(%arg0: i32) -> (i32, i32) {
    %c0_i32 = arith.constant 0 : i32
    %c0_i32_0 = arith.constant 0 : i32
    %c0_i32_1 = arith.constant 0 : i32
    return %c0_i32, %c0_i32_0 : i32, i32
  }
  func.func @transform_5(%arg0: i32) -> (i32, i32) {
    %c0_i32 = arith.constant 0 : i32
    %c0_i32_0 = arith.constant 0 : i32
    return %arg0, %c0_i32 : i32, i32
  }
}

module attributes {stable_mosaic.version = 11 : i64} {
  func.func @_fused_mlp_kernel(%arg0: i32, %arg1: memref<16x128xbf16, #tpu.memory_space<vmem>>, %arg2: memref<128x128xbf16, #tpu.memory_space<vmem>>, %arg3: memref<1x128xf32, #tpu.memory_space<vmem>>, %arg4: memref<128x128xbf16, #tpu.memory_space<vmem>>, %arg5: memref<1x128xf32, #tpu.memory_space<vmem>>, %arg6: memref<16x128xf32, #tpu.memory_space<vmem>>) attributes {dimension_semantics = [#tpu.dimension_semantics<parallel>], iteration_bounds = array<i64: 1>, scalar_prefetch = 0 : i64, scratch_operands = 0 : i64, tpu.core_type = #tpu.core_type<tc>, window_params = [{transform_indices = @transform_0, window_bounds = array<i64: 16, 128>}, {pipeline_mode = #tpu.pipeline_mode<synchronous>, transform_indices = @transform_1, window_bounds = array<i64: 128, 128>}, {pipeline_mode = #tpu.pipeline_mode<synchronous>, transform_indices = @transform_2, window_bounds = array<i64: 1, 128>}, {pipeline_mode = #tpu.pipeline_mode<synchronous>, transform_indices = @transform_3, window_bounds = array<i64: 128, 128>}, {pipeline_mode = #tpu.pipeline_mode<synchronous>, transform_indices = @transform_4, window_bounds = array<i64: 1, 128>}, {transform_indices = @transform_5, window_bounds = array<i64: 16, 128>}]} {
    %c0 = arith.constant 0 : index
    %c0_0 = arith.constant 0 : index
    %0 = vector.load %arg1[%c0, %c0_0] : memref<16x128xbf16, #tpu.memory_space<vmem>>, vector<16x128xbf16>
    %c0_1 = arith.constant 0 : index
    %c0_2 = arith.constant 0 : index
    %1 = vector.load %arg2[%c0_1, %c0_2] : memref<128x128xbf16, #tpu.memory_space<vmem>>, vector<128x128xbf16>
    %cst = arith.constant dense<0.000000e+00> : vector<16x128xf32>
    %2 = tpu.matmul %0, %1, %cst {dimension_numbers = #tpu.dot_dimension_numbers<[1], [0], [0], [1], [0, 0, 1, 1], [], []>} : vector<16x128xbf16>, vector<128x128xbf16>, vector<16x128xf32> -> vector<16x128xf32>
    %c0_3 = arith.constant 0 : index
    %c0_4 = arith.constant 0 : index
    %3 = vector.load %arg3[%c0_3, %c0_4] : memref<1x128xf32, #tpu.memory_space<vmem>>, vector<1x128xf32>
    %4 = vector.broadcast %3 : vector<1x128xf32> to vector<16x128xf32>
    %5 = arith.addf %2, %4 : vector<16x128xf32>
    %6 = arith.truncf %5 : vector<16x128xf32> to vector<16x128xbf16>
    %c0_5 = arith.constant 0 : index
    %c0_6 = arith.constant 0 : index
    %7 = vector.load %arg4[%c0_5, %c0_6] : memref<128x128xbf16, #tpu.memory_space<vmem>>, vector<128x128xbf16>
    %cst_7 = arith.constant dense<0.000000e+00> : vector<16x128xf32>
    %8 = tpu.matmul %6, %7, %cst_7 {dimension_numbers = #tpu.dot_dimension_numbers<[1], [0], [0], [1], [0, 0, 1, 1], [], []>} : vector<16x128xbf16>, vector<128x128xbf16>, vector<16x128xf32> -> vector<16x128xf32>
    %c0_8 = arith.constant 0 : index
    %c0_9 = arith.constant 0 : index
    %9 = vector.load %arg5[%c0_8, %c0_9] : memref<1x128xf32, #tpu.memory_space<vmem>>, vector<1x128xf32>
    %10 = vector.broadcast %9 : vector<1x128xf32> to vector<16x128xf32>
    %11 = arith.addf %8, %10 : vector<16x128xf32>
    %c0_10 = arith.constant 0 : index
    %c0_11 = arith.constant 0 : index
    %12 = vector.load %arg6[%c0_10, %c0_11] : memref<16x128xf32, #tpu.memory_space<vmem>>, vector<16x128xf32>
    tpu.vector_store %arg6[%c0_10, %c0_11], %11 {strides = array<i32>} : memref<16x128xf32, #tpu.memory_space<vmem>>, vector<16x128xf32>,
    return
  }
  func.func @transform_0(%arg0: i32) -> (i32, i32) {
    %c0_i32 = arith.constant 0 : i32
    %c0_i32_0 = arith.constant 0 : i32
    return %arg0, %c0_i32 : i32, i32
  }
  func.func @transform_1(%arg0: i32) -> (i32, i32) {
    %c0_i32 = arith.constant 0 : i32
    %c0_i32_0 = arith.constant 0 : i32
    %c0_i32_1 = arith.constant 0 : i32
    return %c0_i32, %c0_i32_0 : i32, i32
  }
  func.func @transform_2(%arg0: i32) -> (i32, i32) {
    %c0_i32 = arith.constant 0 : i32
    %c0_i32_0 = arith.constant 0 : i32
    %c0_i32_1 = arith.constant 0 : i32
    return %c0_i32, %c0_i32_0 : i32, i32
  }
  func.func @transform_3(%arg0: i32) -> (i32, i32) {
    %c0_i32 = arith.constant 0 : i32
    %c0_i32_0 = arith.constant 0 : i32
    %c0_i32_1 = arith.constant 0 : i32
    return %c0_i32, %c0_i32_0 : i32, i32
  }
  func.func @transform_4(%arg0: i32) -> (i32, i32) {
    %c0_i32 = arith.constant 0 : i32
    %c0_i32_0 = arith.constant 0 : i32
    %c0_i32_1 = arith.constant 0 : i32
    return %c0_i32, %c0_i32_0 : i32, i32
  }
  func.func @transform_5(%arg0: i32) -> (i32, i32) {
    %c0_i32 = arith.constant 0 : i32
    %c0_i32_0 = arith.constant 0 : i32
    return %arg0, %c0_i32 : i32, i32
  }
}

</mosaic_0001>

<bundles_post_ra>
// kernel: tpu_custom_call.1
= control target key start
LH: loop header
LB: loop body
LE: loop exit
PB: predicated region body
PF: predicated region fallthrough
CT: control target
= control target key end

     0   :  { %10 = vsyncpa [#allocation3], 0  ;;  %s516_s0 = inlined_call_operand.hbm [shape: bf16[16,128], index: 0, kind: input, shape index: {}]   ;;  %s517_s1 = inlined_call_operand.hbm [shape: bf16[128,128], index: 1, kind: input, shape index: {}]   ;;  %s518_s2 = inlined_call_operand.vmem [shape: f32[1,128], index: 2, kind: input, shape index: {}]   ;;  %s519_s3 = inlined_call_operand.hbm [shape: bf16[128,128], index: 3, kind: input, shape index: {}]   ;;  %s520_s4 = inlined_call_operand.vmem [shape: f32[1,128], index: 4, kind: input, shape index: {}]   ;;  %s521_s5 = inlined_call_operand.hbm [shape: f32[16,128], index: 5, kind: output, shape index: {}]  }
   0x1   :  { %11 = vsyncpa [#allocation6], 0 }
   0x2   :  { %12 = vsyncpa [#allocation4], 0  ;;  %s30_s20 = sshll.u32 %s517_s1, 4  ;;  %s460_s21 = smov [#allocation5]   ;;  %s31_s20 = int_to_ptr.hbm [resolvable:$true] %s30_s20 }
   0x3   :  { %s32_s22 = sshll.u32 %s460_s21, 4  ;;  %s17_s25 = sshll.u32 %s516_s0, 4  ;;  %s33_s22 = int_to_ptr.vmem [resolvable:$true] %s32_s22  ;;  %s18_s25 = int_to_ptr.hbm [resolvable:$true] %s17_s25 }
   0x4   :  { %s461_s26 = smov 64   ;;  %s462_s27 = smov 4  }
   0x5   :  { %38 = dma.hbm_to_vmem [thread:$0]  %s31_s20, 1024, %s33_s22, [#allocation6], %s461_s26, %s461_s26, %s462_s27  }
   0x6   :  { %s463_s28 = smov [#allocation2]   ;;  %s45_s7 = sshll.u32 %s519_s3, 4  ;;  %s46_s7 = int_to_ptr.hbm [resolvable:$true] %s45_s7 }
   0x7   :  { %s19_s29 = sshll.u32 %s463_s28, 4  ;;  %s464_s1 = smov [#allocation7]   ;;  %s20_s29 = int_to_ptr.vmem [resolvable:$true] %s19_s29 }
   0x8   :  { %25 = dma.hbm_to_vmem [thread:$0]  %s18_s25, 128, %s20_s29, [#allocation3], %s461_s26, %s461_s26, %s462_s27  }
   0x9   :  { %s47_s8 = sshll.u32 %s464_s1, 4  ;;  %s48_s8 = int_to_ptr.vmem [resolvable:$true] %s47_s8 }
   0xa   :  { %53 = dma.hbm_to_vmem [thread:$0]  %s46_s7, 1024, %s48_s8, [#allocation6], %s461_s26, %s461_s26, %s462_s27  }
   0xb   :  { %454 = dma.done.wait [#allocation3], 128  }
   0xc   :  { %455 = vsyncadd [#allocation3], 4294967168 }
   0xd   :  { %456 = dma.done.wait [#allocation6], 2048  }
   0xe   :  { %457 = vsyncadd [#allocation6], 4294965248  ;;  %v339_v0 = vld [vmem:[#allocation5 + $0x38] sm:$0xff]  ;;  %v338_v1 = vld [vmem:[#allocation5 + $0x30] sm:$0xff]  ;;  %s465_s11 = smov [#allocation8]   ;;  %s249_s15 = sshll.u32 %s521_s5, 4  ;;  %s250_s15 = int_to_ptr.hbm [resolvable:$true] %s249_s15 }
   0xf   :  { %144 = vmatpush.bf16.msra.mxu0 %v339_v0  ;;  %v347_v2 = vld [vmem:[#allocation7 + $0x38] sm:$0xff]  ;;  %v346_v3 = vld [vmem:[#allocation7 + $0x30] sm:$0xff]  ;;  %v337_v4 = vld [vmem:[#allocation5 + $0x28] sm:$0xff]  ;;  %s247_s12 = sshll.u32 %s465_s11, 4  ;;  %s467_s16 = smov 8   ;;  %s248_s12 = int_to_ptr.vmem [resolvable:$true] %s247_s12 }
  0x10   :  { %227 = vmatpush.bf16.msra.mxu1 %v347_v2  ;;  %v345_v5 = vld [vmem:[#allocation7 + $0x28] sm:$0xff]  ;;  %v336_v6 = vld [vmem:[#allocation5 + $0x20] sm:$0xff]  ;;  %v335_v8 = vld [vmem:[#allocation5 + $0x18] sm:$0xff] }
  0x11   :  { %v344_v7 = vld [vmem:[#allocation7 + $0x20] sm:$0xff]  ;;  %v343_v9 = vld [vmem:[#allocation7 + $0x18] sm:$0xff]  ;;  %v334_v10 = vld [vmem:[#allocation5 + $0x10] sm:$0xff] }
  0x12   :  { %v333_v11 = vld [vmem:[#allocation5 + $0x8] sm:$0xff]  ;;  %v332_v12 = vld [vmem:[#allocation5] sm:$0xff]  ;;  %v331_v13 = vld [vmem:[#allocation2] sm:$0xff] }
  0x13   :  { %145 = vmatpush.bf16.msra.mxu0 %v338_v1  ;;  %v342_v14 = vld [vmem:[#allocation7 + $0x10] sm:$0xff]  ;;  %v341_v15 = vld [vmem:[#allocation7 + $0x8] sm:$0xff]  ;;  %v340_v16 = vld [vmem:[#allocation7] sm:$0xff] }
  0x14   :  { %228 = vmatpush.bf16.msra.mxu1 %v346_v3  ;;  %v356_v18 = vld [vmem:[%s518_s2] ss:$0 sm:$0xff]  ;;  %s466_s2 = smov 128  }
  0x15   :  { %v357_v23 = vld [vmem:[%s520_s4] ss:$0 sm:$0xff] }
  0x17   :  { %146 = vmatpush.bf16.msra.mxu0 %v337_v4 }
  0x18   :  { %229 = vmatpush.bf16.msra.mxu1 %v345_v5 }
  0x1b   :  { %147 = vmatpush.bf16.msra.mxu0 %v336_v6 }
  0x1c   :  { %230 = vmatpush.bf16.msra.mxu1 %v344_v7 }
  0x1f   :  { %148 = vmatpush.bf16.msra.mxu0 %v335_v8 }
  0x20   :  { %231 = vmatpush.bf16.msra.mxu1 %v343_v9 }
  0x23   :  { %149 = vmatpush.bf16.msra.mxu0 %v334_v10 }
  0x24   :  { %232 = vmatpush.bf16.msra.mxu1 %v342_v14 }
  0x27   :  { %150 = vmatpush.bf16.msra.mxu0 %v333_v11 }
  0x28   :  { %233 = vmatpush.bf16.msra.mxu1 %v341_v15 }
  0x2b   :  { %151 = vmatpush.bf16.msra.mxu0 %v332_v12 }
  0x2c   :  { %234 = vmatpush.bf16.msra.mxu1 %v340_v16 }
  0x2e   :  { %152 = vmatmul.bf16.vlgmr.msra.gmra.mxu0 %v331_v13 }
  0xab   :  { %v153_v17 = vpop.f32.mrf.mxu0 }
  0xac   :  { %v154_v20 = vadd.f32 %v356_v18, %v153_v17 }
  0xb3   :  { %v155_v19 = vpop.f32.mrf.mxu0 }
  0xb4   :  { %v156_v21 = vadd.f32 %v356_v18, %v155_v19 }
  0xb6   :  { %v158_v22 = vpack.c.bf16 %v156_v21, %v154_v20 }
  0xb8   :  { %235 = vmatmul.bf16.vlgmr.msra.gmra.mxu1 %v158_v22 }
 0x135   :  { %v236_v24 = vpop.f32.mrf.mxu1 }
 0x136   :  { %v237_v25 = vadd.f32 %v357_v23, %v236_v24 }
 0x138   :  { %241 = vst [vmem:[#allocation8] sm:$0xff] %v237_v25 }
 0x13d   :  { %v238_v26 = vpop.f32.mrf.mxu1 }
 0x13e   :  { %v239_v27 = vadd.f32 %v357_v23, %v238_v26 }
 0x140   :  { %242 = vst [vmem:[#allocation8 + $0x8] sm:$0xff] %v239_v27 }
 0x141   :  { %255 = dma.vmem_to_hbm [thread:$0]  %s248_s12, 256, %s250_s15, [#allocation4], %s466_s2, %s466_s2, %s467_s16  }
 0x142   :  { %458 = dma.done.wait [#allocation4], 256  }
 0x143   :  { %459 = vsyncadd [#allocation4], 4294967040 }
 0x144   :  { %260 = vsyncpa [#allocation3], 1 }
 0x145   :  { %261 = vsyncpa [#allocation6], 1 }
 0x146   :  { %262 = vsyncpa [#allocation4], 1 }

// kernel: tpu_custom_call.1
= control target key start
LH: loop header
LB: loop body
LE: loop exit
PB: predicated region body
PF: predicated region fallthrough
CT: control target
= control target key end

     0   :  { %10 = vsyncpa [#allocation3], 0  ;;  %s516_s0 = inlined_call_operand.hbm [shape: bf16[16,128], index: 0, kind: input, shape index: {}]   ;;  %s517_s1 = inlined_call_operand.hbm [shape: bf16[128,128], index: 1, kind: input, shape index: {}]   ;;  %s518_s2 = inlined_call_operand.vmem [shape: f32[1,128], index: 2, kind: input, shape index: {}]   ;;  %s519_s3 = inlined_call_operand.hbm [shape: bf16[128,128], index: 3, kind: input, shape index: {}]   ;;  %s520_s4 = inlined_call_operand.vmem [shape: f32[1,128], index: 4, kind: input, shape index: {}]   ;;  %s521_s5 = inlined_call_operand.hbm [shape: f32[16,128], index: 5, kind: output, shape index: {}]  }
   0x1   :  { %11 = vsyncpa [#allocation6], 0 }
   0x2   :  { %12 = vsyncpa [#allocation4], 0  ;;  %s30_s20 = sshll.u32 %s517_s1, 4  ;;  %s460_s21 = smov [#allocation5]   ;;  %s31_s20 = int_to_ptr.hbm [resolvable:$true] %s30_s20 }
   0x3   :  { %s32_s22 = sshll.u32 %s460_s21, 4  ;;  %s17_s25 = sshll.u32 %s516_s0, 4  ;;  %s33_s22 = int_to_ptr.vmem [resolvable:$true] %s32_s22  ;;  %s18_s25 = int_to_ptr.hbm [resolvable:$true] %s17_s25 }
   0x4   :  { %s461_s26 = smov 64   ;;  %s462_s27 = smov 4  }
   0x5   :  { %38 = dma.hbm_to_vmem [thread:$0]  %s31_s20, 1024, %s33_s22, [#allocation6], %s461_s26, %s461_s26, %s462_s27  }
   0x6   :  { %s463_s28 = smov [#allocation2]   ;;  %s45_s7 = sshll.u32 %s519_s3, 4  ;;  %s46_s7 = int_to_ptr.hbm [resolvable:$true] %s45_s7 }
   0x7   :  { %s19_s29 = sshll.u32 %s463_s28, 4  ;;  %s464_s1 = smov [#allocation7]   ;;  %s20_s29 = int_to_ptr.vmem [resolvable:$true] %s19_s29 }
   0x8   :  { %25 = dma.hbm_to_vmem [thread:$0]  %s18_s25, 128, %s20_s29, [#allocation3], %s461_s26, %s461_s26, %s462_s27  }
   0x9   :  { %s47_s8 = sshll.u32 %s464_s1, 4  ;;  %s48_s8 = int_to_ptr.vmem [resolvable:$true] %s47_s8 }
   0xa   :  { %53 = dma.hbm_to_vmem [thread:$0]  %s46_s7, 1024, %s48_s8, [#allocation6], %s461_s26, %s461_s26, %s462_s27  }
   0xb   :  { %454 = dma.done.wait [#allocation3], 128  }
   0xc   :  { %455 = vsyncadd [#allocation3], 4294967168 }
   0xd   :  { %456 = dma.done.wait [#allocation6], 2048  }
   0xe   :  { %457 = vsyncadd [#allocation6], 4294965248  ;;  %v339_v0 = vld [vmem:[#allocation5 + $0x38] sm:$0xff]  ;;  %v338_v1 = vld [vmem:[#allocation5 + $0x30] sm:$0xff]  ;;  %s465_s11 = smov [#allocation8]   ;;  %s249_s15 = sshll.u32 %s521_s5, 4  ;;  %s250_s15 = int_to_ptr.hbm [resolvable:$true] %s249_s15 }
   0xf   :  { %144 = vmatpush.bf16.msra.mxu0 %v339_v0  ;;  %v347_v2 = vld [vmem:[#allocation7 + $0x38] sm:$0xff]  ;;  %v346_v3 = vld [vmem:[#allocation7 + $0x30] sm:$0xff]  ;;  %v337_v4 = vld [vmem:[#allocation5 + $0x28] sm:$0xff]  ;;  %s247_s12 = sshll.u32 %s465_s11, 4  ;;  %s467_s16 = smov 8   ;;  %s248_s12 = int_to_ptr.vmem [resolvable:$true] %s247_s12 }
  0x10   :  { %227 = vmatpush.bf16.msra.mxu1 %v347_v2  ;;  %v345_v5 = vld [vmem:[#allocation7 + $0x28] sm:$0xff]  ;;  %v336_v6 = vld [vmem:[#allocation5 + $0x20] sm:$0xff]  ;;  %v335_v8 = vld [vmem:[#allocation5 + $0x18] sm:$0xff] }
  0x11   :  { %v344_v7 = vld [vmem:[#allocation7 + $0x20] sm:$0xff]  ;;  %v343_v9 = vld [vmem:[#allocation7 + $0x18] sm:$0xff]  ;;  %v334_v10 = vld [vmem:[#allocation5 + $0x10] sm:$0xff] }
  0x12   :  { %v333_v11 = vld [vmem:[#allocation5 + $0x8] sm:$0xff]  ;;  %v332_v12 = vld [vmem:[#allocation5] sm:$0xff]  ;;  %v331_v13 = vld [vmem:[#allocation2] sm:$0xff] }
  0x13   :  { %145 = vmatpush.bf16.msra.mxu0 %v338_v1  ;;  %v342_v14 = vld [vmem:[#allocation7 + $0x10] sm:$0xff]  ;;  %v341_v15 = vld [vmem:[#allocation7 + $0x8] sm:$0xff]  ;;  %v340_v16 = vld [vmem:[#allocation7] sm:$0xff] }
  0x14   :  { %228 = vmatpush.bf16.msra.mxu1 %v346_v3  ;;  %v356_v18 = vld [vmem:[%s518_s2] ss:$0 sm:$0xff]  ;;  %s466_s2 = smov 128  }
  0x15   :  { %v357_v23 = vld [vmem:[%s520_s4] ss:$0 sm:$0xff] }
  0x17   :  { %146 = vmatpush.bf16.msra.mxu0 %v337_v4 }
  0x18   :  { %229 = vmatpush.bf16.msra.mxu1 %v345_v5 }
  0x1b   :  { %147 = vmatpush.bf16.msra.mxu0 %v336_v6 }
  0x1c   :  { %230 = vmatpush.bf16.msra.mxu1 %v344_v7 }
  0x1f   :  { %148 = vmatpush.bf16.msra.mxu0 %v335_v8 }
  0x20   :  { %231 = vmatpush.bf16.msra.mxu1 %v343_v9 }
  0x23   :  { %149 = vmatpush.bf16.msra.mxu0 %v334_v10 }
  0x24   :  { %232 = vmatpush.bf16.msra.mxu1 %v342_v14 }
  0x27   :  { %150 = vmatpush.bf16.msra.mxu0 %v333_v11 }
  0x28   :  { %233 = vmatpush.bf16.msra.mxu1 %v341_v15 }
  0x2b   :  { %151 = vmatpush.bf16.msra.mxu0 %v332_v12 }
  0x2c   :  { %234 = vmatpush.bf16.msra.mxu1 %v340_v16 }
  0x2e   :  { %152 = vmatmul.bf16.vlgmr.msra.gmra.mxu0 %v331_v13 }
  0xab   :  { %v153_v17 = vpop.f32.mrf.mxu0 }
  0xac   :  { %v154_v20 = vadd.f32 %v356_v18, %v153_v17 }
  0xb3   :  { %v155_v19 = vpop.f32.mrf.mxu0 }
  0xb4   :  { %v156_v21 = vadd.f32 %v356_v18, %v155_v19 }
  0xb6   :  { %v158_v22 = vpack.c.bf16 %v156_v21, %v154_v20 }
  0xb8   :  { %235 = vmatmul.bf16.vlgmr.msra.gmra.mxu1 %v158_v22 }
 0x135   :  { %v236_v24 = vpop.f32.mrf.mxu1 }
 0x136   :  { %v237_v25 = vadd.f32 %v357_v23, %v236_v24 }
 0x138   :  { %241 = vst [vmem:[#allocation8] sm:$0xff] %v237_v25 }
 0x13d   :  { %v238_v26 = vpop.f32.mrf.mxu1 }
 0x13e   :  { %v239_v27 = vadd.f32 %v357_v23, %v238_v26 }
 0x140   :  { %242 = vst [vmem:[#allocation8 + $0x8] sm:$0xff] %v239_v27 }
 0x141   :  { %255 = dma.vmem_to_hbm [thread:$0]  %s248_s12, 256, %s250_s15, [#allocation4], %s466_s2, %s466_s2, %s467_s16  }
 0x142   :  { %458 = dma.done.wait [#allocation4], 256  }
 0x143   :  { %459 = vsyncadd [#allocation4], 4294967040 }
 0x144   :  { %260 = vsyncpa [#allocation3], 1 }
 0x145   :  { %261 = vsyncpa [#allocation6], 1 }
 0x146   :  { %262 = vsyncpa [#allocation4], 1 }

</bundles_post_ra>
